<compile_context>
chip_gen: v7x
topology: tpu7x:2x2x1
jax: 0.10.0
libtpu: 0.0.40
codegen_flags: <defaults>
</compile_context>

<pallas_src>
from functools import lru_cache, partial

import numpy as np
import jax
import jax.numpy as jnp
from jax.experimental import pallas as pl
from jax.experimental.pallas import tpu as pltpu


def _fused_kernel(x_ref, w_ref, b_ref, pm_ref, o_ref, patches_ref, *,
                  kh_size, kw_size, width, hw, c_pad, sub1, sub2):
    """Refs:
       x_ref:       (N, C_pad, H*W)          channel-padded, flat spatial on lanes
       w_ref:       (OC, KH*KW*C_pad)        tap-major / channel-minor columns
       b_ref:       (OC, 1)                  conv bias
       pm_ref:      (N*H*W, N*P_pad)         block-diagonal average-pooling matrix
       o_ref:       (OC, N*P_pad)            lane-dense pooled output
       patches_ref: (KH*KW*C_pad, N*H*W)     VMEM scratch for the im2col buffer
    """
    n_batch = x_ref.shape[0]

    # im2col: each tap is a single XLU lane rotation of a full (8, HW) tile written
    # into a sublane/lane-aligned block of the scratch.  Wrapped lanes only land on
    # conv-output positions the pooling matrix never samples (asserted in wrapper).
    for n in range(n_batch):
        xn = x_ref[n].astype(jnp.float32)                      # (C_pad, HW)
        for kh in range(kh_size):
            for kw in range(kw_size):
                off = kh * width + kw
                t = kh * kw_size + kw
                tap = xn if off == 0 else pltpu.roll(xn, hw - off, axis=1)
                patches_ref[pl.ds(t * c_pad, c_pad), pl.ds(n * hw, hw)] = tap

    w_mat = w_ref[...].astype(jnp.float32)                     # (OC, K*C_pad)
    bias = b_ref[...].astype(jnp.float32) - sub1               # fold sub1 once

    # Whole conv (both batch elements) = ONE MXU matmul, (OC, N*HW) lane-dense acc.
    acc = jnp.dot(w_mat, patches_ref[...], preferred_element_type=jnp.float32)
    y = jnp.tanh(acc + bias) - sub2                            # fused elementwise

    # AvgPool2d(pool, stride=pool, floor mode) as one block-diagonal constant matmul;
    # columns padded to a multiple of 128 -> unmasked lane-dense stores.
    pooled = jnp.dot(y, pm_ref[...].astype(jnp.float32),
                     preferred_element_type=jnp.float32)       # (OC, N*P_pad)
    o_ref[...] = pooled.astype(o_ref.dtype)


@lru_cache(maxsize=None)
def _block_diag_pool_matrix(n, h, w, ph, pw, pool, p_pad):
    """(N*H*W, N*P_pad) block-diagonal matrix: flat conv positions -> pooled outputs."""
    hw = h * w
    m = np.zeros((n * hw, n * p_pad), np.float32)
    inv = 1.0 / float(pool * pool)
    for b in range(n):
        for i in range(ph):
            for j in range(pw):
                col = b * p_pad + i * pw + j
                for di in range(pool):
                    for dj in range(pool):
                        row = b * hw + (pool * i + di) * w + (pool * j + dj)
                        m[row, col] = inv
    return jnp.asarray(m)


def conv_tanh_sub_pool(x_nchw, w_oihw, bias, sub1, sub2, pool):
    n, cin, h, wd = x_nchw.shape
    oc, _, kh, kw = w_oihw.shape
    oh, ow = h - kh + 1, wd - kw + 1
    ph, pw = oh // pool, ow // pool
    hw = h * wd

    # Safety: the roll-based im2col only feeds garbage into conv-output positions
    # that the (VALID conv + floor-mode pool) sampling never touches.  Assert it.
    max_sampled = (ph * pool - 1) * wd + (pw * pool - 1)
    max_off = (kh - 1) * wd + (kw - 1)
    assert max_sampled + max_off < hw, "pool/conv config breaks roll-wrap assumption"

    # Pad channels to a full 8-sublane tile so every im2col tap is tile-aligned.
    c_pad = max(8, ((cin + 7) // 8) * 8)
    p_pad = ((ph * pw + 127) // 128) * 128        # lane-dense output width (>=128)

    x_flat = jnp.pad(x_nchw.reshape(n, cin, hw),
                     ((0, 0), (0, c_pad - cin), (0, 0)))                     # (N,Cp,HW)
    w_pad = jnp.pad(w_oihw, ((0, 0), (0, c_pad - cin), (0, 0), (0, 0)))      # (OC,Cp,KH,KW)
    w_mat = jnp.transpose(w_pad, (0, 2, 3, 1)).reshape(oc, kh * kw * c_pad)  # (OC,K*Cp)
    b_col = bias.reshape(oc, 1)                                              # (OC,1)
    pool_mat = _block_diag_pool_matrix(n, h, wd, ph, pw, pool, p_pad)        # (N*HW,N*Pp)

    # Guard against the dense pool matrix blowing VMEM at larger spatial sizes.
    assert pool_mat.size * 4 < 16 * 1024 * 1024, "block the pool matrix for large H*W"

    kernel = partial(_fused_kernel, kh_size=kh, kw_size=kw, width=wd, hw=hw,
                     c_pad=c_pad, sub1=float(sub1), sub2=float(sub2))

    flops = 2 * oc * (kh * kw * c_pad) * (n * hw) + 2 * oc * (n * hw) * (n * p_pad)
    bytes_accessed = 4 * (x_flat.size + w_mat.size + b_col.size
                          + pool_mat.size + oc * n * p_pad)

    out = pl.pallas_call(
        kernel,
        out_shape=jax.ShapeDtypeStruct((oc, n * p_pad), x_nchw.dtype),
        in_specs=[pl.BlockSpec(memory_space=pltpu.MemorySpace.VMEM)] * 4,
        out_specs=pl.BlockSpec(memory_space=pltpu.MemorySpace.VMEM),
        scratch_shapes=[pltpu.VMEM((kh * kw * c_pad, n * hw), jnp.float32)],
        cost_estimate=pl.CostEstimate(flops=flops,
                                      transcendentals=oc * n * hw,
                                      bytes_accessed=bytes_accessed),
    )(x_flat, w_mat, b_col, pool_mat)

    # Tiny output (few KiB): slice off lane padding and rearrange to NCHW.
    out = out.reshape(oc, n, p_pad)[:, :, :ph * pw]
    return jnp.transpose(out, (1, 0, 2)).reshape(n, oc, ph, pw)


def _reference(x_nchw, w_oihw, bias, sub1, sub2, pool):
    y = jax.lax.conv_general_dilated(
        x_nchw, w_oihw, window_strides=(1, 1), padding="VALID",
        dimension_numbers=("NCHW", "OIHW", "NCHW"))
    y = y + bias[None, :, None, None]
    y = jnp.tanh(y - sub1) - sub2
    n, oc, oh, ow = y.shape
    ph, pw = oh // pool, ow // pool
    y = y[:, :, :ph * pool, :pw * pool]
    y = y.reshape(n, oc, ph, pool, pw, pool).mean(axis=(3, 5))
    return y


if __name__ == "__main__":
    # Module hyperparameters
    in_channels, out_channels, kernel_size = 4, 8, 3
    subtract1_value, subtract2_value = 0.5, 0.2
    kernel_size_pool = 2

    # Deterministic parameter init (uniform in +/- 1/sqrt(fan_in), like nn.Conv2d)
    key = jax.random.PRNGKey(0)
    kx, kw_key, kb = jax.random.split(key, 3)
    fan_in = in_channels * kernel_size * kernel_size
    bound = 1.0 / (fan_in ** 0.5)
    weight = jax.random.uniform(kw_key, (out_channels, in_channels, kernel_size, kernel_size),
                                dtype=jnp.float32, minval=-bound, maxval=bound)
    bias = jax.random.uniform(kb, (out_channels,), dtype=jnp.float32,
                              minval=-bound, maxval=bound)

    # Example input (NCHW, like PyTorch)
    x = jax.random.normal(kx, (2, in_channels, 16, 16), dtype=jnp.float32)

    out = conv_tanh_sub_pool(x, weight, bias,
                             subtract1_value, subtract2_value, kernel_size_pool)
    out = jax.block_until_ready(out)

    ref = _reference(x, weight, bias, subtract1_value, subtract2_value, kernel_size_pool)
    assert out.shape == ref.shape, (out.shape, ref.shape)
    assert jnp.allclose(out, ref, atol=2e-4, rtol=2e-4), float(jnp.max(jnp.abs(out - ref)))

    print("KERNEL_OK")
</pallas_src>

<mosaic_0001>
module attributes {stable_mosaic.version = 11 : i64} {
  func.func @_fused_kernel(%arg0: memref<2x8x256xf32, #tpu.memory_space<vmem>>, %arg1: memref<8x72xf32, #tpu.memory_space<vmem>>, %arg2: memref<8x1xf32, #tpu.memory_space<vmem>>, %arg3: memref<512x256xf32, #tpu.memory_space<vmem>>, %arg4: memref<8x256xf32, #tpu.memory_space<vmem>>, %arg5: memref<72x512xf32, #tpu.memory_space<vmem>>) attributes {dimension_semantics = [], scalar_prefetch = 0 : i64, scratch_operands = 1 : i64, tpu.core_type = #tpu.core_type<tc>} {
    %c0 = arith.constant 0 : index
    %c0_0 = arith.constant 0 : index
    %c0_1 = arith.constant 0 : index
    %0 = vector.load %arg0[%c0, %c0_0, %c0_1] : memref<2x8x256xf32, #tpu.memory_space<vmem>>, vector<1x8x256xf32>
    %1 = vector.shape_cast %0 : vector<1x8x256xf32> to vector<8x256xf32>
    %c0_2 = arith.constant 0 : index
    %c0_3 = arith.constant 0 : index
    %2 = vector.load %arg5[%c0_2, %c0_3] : memref<72x512xf32, #tpu.memory_space<vmem>>, vector<8x256xf32>
    tpu.vector_store %arg5[%c0_2, %c0_3], %1 {strides = array<i32>} : memref<72x512xf32, #tpu.memory_space<vmem>>, vector<8x256xf32>,
    %c255_i32 = arith.constant 255 : i32
    %3 = tpu.dynamic_rotate %1 by %c255_i32 dim 1 : vector<8x256xf32>, i32 -> vector<8x256xf32>
    %c8 = arith.constant 8 : index
    %c0_4 = arith.constant 0 : index
    %4 = vector.load %arg5[%c8, %c0_4] : memref<72x512xf32, #tpu.memory_space<vmem>>, vector<8x256xf32>
    tpu.vector_store %arg5[%c8, %c0_4], %3 {strides = array<i32>} : memref<72x512xf32, #tpu.memory_space<vmem>>, vector<8x256xf32>,
    %c254_i32 = arith.constant 254 : i32
    %5 = tpu.dynamic_rotate %1 by %c254_i32 dim 1 : vector<8x256xf32>, i32 -> vector<8x256xf32>
    %c16 = arith.constant 16 : index
    %c0_5 = arith.constant 0 : index
    %6 = vector.load %arg5[%c16, %c0_5] : memref<72x512xf32, #tpu.memory_space<vmem>>, vector<8x256xf32>
    tpu.vector_store %arg5[%c16, %c0_5], %5 {strides = array<i32>} : memref<72x512xf32, #tpu.memory_space<vmem>>, vector<8x256xf32>,
    %c240_i32 = arith.constant 240 : i32
    %7 = tpu.dynamic_rotate %1 by %c240_i32 dim 1 : vector<8x256xf32>, i32 -> vector<8x256xf32>
    %c24 = arith.constant 24 : index
    %c0_6 = arith.constant 0 : index
    %8 = vector.load %arg5[%c24, %c0_6] : memref<72x512xf32, #tpu.memory_space<vmem>>, vector<8x256xf32>
    tpu.vector_store %arg5[%c24, %c0_6], %7 {strides = array<i32>} : memref<72x512xf32, #tpu.memory_space<vmem>>, vector<8x256xf32>,
    %c239_i32 = arith.constant 239 : i32
    %9 = tpu.dynamic_rotate %1 by %c239_i32 dim 1 : vector<8x256xf32>, i32 -> vector<8x256xf32>
    %c32 = arith.constant 32 : index
    %c0_7 = arith.constant 0 : index
    %10 = vector.load %arg5[%c32, %c0_7] : memref<72x512xf32, #tpu.memory_space<vmem>>, vector<8x256xf32>
    tpu.vector_store %arg5[%c32, %c0_7], %9 {strides = array<i32>} : memref<72x512xf32, #tpu.memory_space<vmem>>, vector<8x256xf32>,
    %c238_i32 = arith.constant 238 : i32
    %11 = tpu.dynamic_rotate %1 by %c238_i32 dim 1 : vector<8x256xf32>, i32 -> vector<8x256xf32>
    %c40 = arith.constant 40 : index
    %c0_8 = arith.constant 0 : index
    %12 = vector.load %arg5[%c40, %c0_8] : memref<72x512xf32, #tpu.memory_space<vmem>>, vector<8x256xf32>
    tpu.vector_store %arg5[%c40, %c0_8], %11 {strides = array<i32>} : memref<72x512xf32, #tpu.memory_space<vmem>>, vector<8x256xf32>,
    %c224_i32 = arith.constant 224 : i32
    %13 = tpu.dynamic_rotate %1 by %c224_i32 dim 1 : vector<8x256xf32>, i32 -> vector<8x256xf32>
    %c48 = arith.constant 48 : index
    %c0_9 = arith.constant 0 : index
    %14 = vector.load %arg5[%c48, %c0_9] : memref<72x512xf32, #tpu.memory_space<vmem>>, vector<8x256xf32>
    tpu.vector_store %arg5[%c48, %c0_9], %13 {strides = array<i32>} : memref<72x512xf32, #tpu.memory_space<vmem>>, vector<8x256xf32>,
    %c223_i32 = arith.constant 223 : i32
    %15 = tpu.dynamic_rotate %1 by %c223_i32 dim 1 : vector<8x256xf32>, i32 -> vector<8x256xf32>
    %c56 = arith.constant 56 : index
    %c0_10 = arith.constant 0 : index
    %16 = vector.load %arg5[%c56, %c0_10] : memref<72x512xf32, #tpu.memory_space<vmem>>, vector<8x256xf32>
    tpu.vector_store %arg5[%c56, %c0_10], %15 {strides = array<i32>} : memref<72x512xf32, #tpu.memory_space<vmem>>, vector<8x256xf32>,
    %c222_i32 = arith.constant 222 : i32
    %17 = tpu.dynamic_rotate %1 by %c222_i32 dim 1 : vector<8x256xf32>, i32 -> vector<8x256xf32>
    %c64 = arith.constant 64 : index
    %c0_11 = arith.constant 0 : index
    %18 = vector.load %arg5[%c64, %c0_11] : memref<72x512xf32, #tpu.memory_space<vmem>>, vector<8x256xf32>
    tpu.vector_store %arg5[%c64, %c0_11], %17 {strides = array<i32>} : memref<72x512xf32, #tpu.memory_space<vmem>>, vector<8x256xf32>,
    %c1 = arith.constant 1 : index
    %c0_12 = arith.constant 0 : index
    %c0_13 = arith.constant 0 : index
    %19 = vector.load %arg0[%c1, %c0_12, %c0_13] : memref<2x8x256xf32, #tpu.memory_space<vmem>>, vector<1x8x256xf32>
    %20 = vector.shape_cast %19 : vector<1x8x256xf32> to vector<8x256xf32>
    %c0_14 = arith.constant 0 : index
    %c256 = arith.constant 256 : index
    %21 = vector.load %arg5[%c0_14, %c256] : memref<72x512xf32, #tpu.memory_space<vmem>>, vector<8x256xf32>
    tpu.vector_store %arg5[%c0_14, %c256], %20 {strides = array<i32>} : memref<72x512xf32, #tpu.memory_space<vmem>>, vector<8x256xf32>,
    %c255_i32_15 = arith.constant 255 : i32
    %22 = tpu.dynamic_rotate %20 by %c255_i32_15 dim 1 : vector<8x256xf32>, i32 -> vector<8x256xf32>
    %c8_16 = arith.constant 8 : index
    %c256_17 = arith.constant 256 : index
    %23 = vector.load %arg5[%c8_16, %c256_17] : memref<72x512xf32, #tpu.memory_space<vmem>>, vector<8x256xf32>
    tpu.vector_store %arg5[%c8_16, %c256_17], %22 {strides = array<i32>} : memref<72x512xf32, #tpu.memory_space<vmem>>, vector<8x256xf32>,
    %c254_i32_18 = arith.constant 254 : i32
    %24 = tpu.dynamic_rotate %20 by %c254_i32_18 dim 1 : vector<8x256xf32>, i32 -> vector<8x256xf32>
    %c16_19 = arith.constant 16 : index
    %c256_20 = arith.constant 256 : index
    %25 = vector.load %arg5[%c16_19, %c256_20] : memref<72x512xf32, #tpu.memory_space<vmem>>, vector<8x256xf32>
    tpu.vector_store %arg5[%c16_19, %c256_20], %24 {strides = array<i32>} : memref<72x512xf32, #tpu.memory_space<vmem>>, vector<8x256xf32>,
    %c240_i32_21 = arith.constant 240 : i32
    %26 = tpu.dynamic_rotate %20 by %c240_i32_21 dim 1 : vector<8x256xf32>, i32 -> vector<8x256xf32>
    %c24_22 = arith.constant 24 : index
    %c256_23 = arith.constant 256 : index
    %27 = vector.load %arg5[%c24_22, %c256_23] : memref<72x512xf32, #tpu.memory_space<vmem>>, vector<8x256xf32>
    tpu.vector_store %arg5[%c24_22, %c256_23], %26 {strides = array<i32>} : memref<72x512xf32, #tpu.memory_space<vmem>>, vector<8x256xf32>,
    %c239_i32_24 = arith.constant 239 : i32
    %28 = tpu.dynamic_rotate %20 by %c239_i32_24 dim 1 : vector<8x256xf32>, i32 -> vector<8x256xf32>
    %c32_25 = arith.constant 32 : index
    %c256_26 = arith.constant 256 : index
    %29 = vector.load %arg5[%c32_25, %c256_26] : memref<72x512xf32, #tpu.memory_space<vmem>>, vector<8x256xf32>
    tpu.vector_store %arg5[%c32_25, %c256_26], %28 {strides = array<i32>} : memref<72x512xf32, #tpu.memory_space<vmem>>, vector<8x256xf32>,
    %c238_i32_27 = arith.constant 238 : i32
    %30 = tpu.dynamic_rotate %20 by %c238_i32_27 dim 1 : vector<8x256xf32>, i32 -> vector<8x256xf32>
    %c40_28 = arith.constant 40 : index
    %c256_29 = arith.constant 256 : index
    %31 = vector.load %arg5[%c40_28, %c256_29] : memref<72x512xf32, #tpu.memory_space<vmem>>, vector<8x256xf32>
    tpu.vector_store %arg5[%c40_28, %c256_29], %30 {strides = array<i32>} : memref<72x512xf32, #tpu.memory_space<vmem>>, vector<8x256xf32>,
    %c224_i32_30 = arith.constant 224 : i32
    %32 = tpu.dynamic_rotate %20 by %c224_i32_30 dim 1 : vector<8x256xf32>, i32 -> vector<8x256xf32>
    %c48_31 = arith.constant 48 : index
    %c256_32 = arith.constant 256 : index
    %33 = vector.load %arg5[%c48_31, %c256_32] : memref<72x512xf32, #tpu.memory_space<vmem>>, vector<8x256xf32>
    tpu.vector_store %arg5[%c48_31, %c256_32], %32 {strides = array<i32>} : memref<72x512xf32, #tpu.memory_space<vmem>>, vector<8x256xf32>,
    %c223_i32_33 = arith.constant 223 : i32
    %34 = tpu.dynamic_rotate %20 by %c223_i32_33 dim 1 : vector<8x256xf32>, i32 -> vector<8x256xf32>
    %c56_34 = arith.constant 56 : index
    %c256_35 = arith.constant 256 : index
    %35 = vector.load %arg5[%c56_34, %c256_35] : memref<72x512xf32, #tpu.memory_space<vmem>>, vector<8x256xf32>
    tpu.vector_store %arg5[%c56_34, %c256_35], %34 {strides = array<i32>} : memref<72x512xf32, #tpu.memory_space<vmem>>, vector<8x256xf32>,
    %c222_i32_36 = arith.constant 222 : i32
    %36 = tpu.dynamic_rotate %20 by %c222_i32_36 dim 1 : vector<8x256xf32>, i32 -> vector<8x256xf32>
    %c64_37 = arith.constant 64 : index
    %c256_38 = arith.constant 256 : index
    %37 = vector.load %arg5[%c64_37, %c256_38] : memref<72x512xf32, #tpu.memory_space<vmem>>, vector<8x256xf32>
    tpu.vector_store %arg5[%c64_37, %c256_38], %36 {strides = array<i32>} : memref<72x512xf32, #tpu.memory_space<vmem>>, vector<8x256xf32>,
    %c0_39 = arith.constant 0 : index
    %c0_40 = arith.constant 0 : index
    %38 = vector.load %arg1[%c0_39, %c0_40] : memref<8x72xf32, #tpu.memory_space<vmem>>, vector<8x72xf32>
    %c0_41 = arith.constant 0 : index
    %c0_42 = arith.constant 0 : index
    %39 = vector.load %arg2[%c0_41, %c0_42] : memref<8x1xf32, #tpu.memory_space<vmem>>, vector<8x1xf32>
    %cst = arith.constant 5.000000e-01 : f32
    %40 = vector.broadcast %cst : f32 to vector<8x1xf32>
    %41 = arith.subf %39, %40 : vector<8x1xf32>
    %c0_43 = arith.constant 0 : index
    %c0_44 = arith.constant 0 : index
    %42 = vector.load %arg5[%c0_43, %c0_44] : memref<72x512xf32, #tpu.memory_space<vmem>>, vector<72x512xf32>
    %cst_45 = arith.constant dense<0.000000e+00> : vector<8x512xf32>
    %43 = tpu.matmul %38, %42, %cst_45 {dimension_numbers = #tpu.dot_dimension_numbers<[1], [0], [0], [1], [0, 0, 1, 1], [], []>} : vector<8x72xf32>, vector<72x512xf32>, vector<8x512xf32> -> vector<8x512xf32>
    %44 = vector.broadcast %41 : vector<8x1xf32> to vector<8x512xf32>
    %45 = arith.addf %43, %44 : vector<8x512xf32>
    %46 = math.tanh %45 : vector<8x512xf32>
    %cst_46 = arith.constant 2.000000e-01 : f32
    %47 = vector.broadcast %cst_46 : f32 to vector<8x512xf32>
    %48 = arith.subf %46, %47 : vector<8x512xf32>
    %c0_47 = arith.constant 0 : index
    %c0_48 = arith.constant 0 : index
    %49 = vector.load %arg3[%c0_47, %c0_48] : memref<512x256xf32, #tpu.memory_space<vmem>>, vector<512x256xf32>
    %cst_49 = arith.constant dense<0.000000e+00> : vector<8x256xf32>
    %50 = tpu.matmul %48, %49, %cst_49 {dimension_numbers = #tpu.dot_dimension_numbers<[1], [0], [0], [1], [0, 0, 1, 1], [], []>} : vector<8x512xf32>, vector<512x256xf32>, vector<8x256xf32> -> vector<8x256xf32>
    %c0_50 = arith.constant 0 : index
    %c0_51 = arith.constant 0 : index
    %51 = vector.load %arg4[%c0_50, %c0_51] : memref<8x256xf32, #tpu.memory_space<vmem>>, vector<8x256xf32>
    tpu.vector_store %arg4[%c0_50, %c0_51], %50 {strides = array<i32>} : memref<8x256xf32, #tpu.memory_space<vmem>>, vector<8x256xf32>,
    return
  }
}

</mosaic_0001>

<bundles_post_ra>
// kernel: tpu_custom_call.1
= control target key start
LH: loop header
LB: loop body
LE: loop exit
PB: predicated region body
PF: predicated region fallthrough
CT: control target
= control target key end

     0   :  { %9 = vsyncpa [#allocation4], 0  ;;  %s1187_s0 = inlined_call_operand.hbm [shape: f32[2,8,256], index: 0, kind: input, shape index: {}]   ;;  %s1188_s1 = inlined_call_operand.vmem [shape: f32[8,72], index: 1, kind: input, shape index: {}]   ;;  %s1189_s2 = inlined_call_operand.vmem [shape: f32[8,1], index: 2, kind: input, shape index: {}]   ;;  %s1190_s3 = inlined_call_operand.hbm [shape: f32[512,256], index: 3, kind: input, shape index: {}]   ;;  %s1191_s4 = inlined_call_operand.hbm [shape: f32[8,256], index: 4, kind: output, shape index: {}]  }
   0x1   :  { %10 = vsyncpa [#allocation7], 0 }
   0x2   :  { %11 = vsyncpa [#allocation5], 0  ;;  %s1014_s15 = smov [#allocation3]   ;;  %s942_s19 = scalar_lea.hbm %s1187_s0, 512 }
   0x3   :  { %s17_s16 = sshll.u32 %s1014_s15, 4  ;;  %p943_p0 = scmp.ne.s32.totalorder %s1187_s0, %s942_s19  ;;  %s18_s16 = int_to_ptr.vmem [resolvable:$true] %s17_s16 }
   0x4   :  { %p946_p1 = scmp.lt.u32.totalorder %s942_s19, %s1187_s0 }
   0x6   :  { %p948_p2 = pnand %p946_p1, %p943_p0 }
   0x8   :  { %951 = shalt.err (!%p948_p2)
}
   0x9   :  { %s952_s24 = scalar_lea.vmem %s18_s16, 512  ;;  %p957_p4 = scmp.lt.s32.totalorder %s18_s16, %s18_s16 }
   0xa   :  { %p953_p3 = scmp.ne.s32.totalorder %s18_s16, %s952_s24  ;;  %p958_p5 = scmp.lt.s32.totalorder %s952_s24, %s952_s24 }
   0xc   :  { %p959_p6 = por %p958_p5, %p957_p4 }
   0xe   :  { %p960_p7 = pnand %p959_p6, %p953_p3 }
  0x10   :  { %963 = shalt.err (!%p960_p7)
}
  0x11   :  { %s1015_s25 = smov 256   ;;  %s1016_s26 = smov 16  }
  0x12   :  { %23 = dma.hbm_to_vmem [thread:$0]  %s1187_s0, 512, %s18_s16, [#allocation4], %s1015_s25, %s1015_s25, %s1016_s26  }
  0x13   :  { %s1017_s29 = smov [#allocation6]   ;;  %s964_s7 = scalar_lea.hbm %s1190_s3, 16384 }
  0x14   :  { %s33_s30 = sshll.u32 %s1017_s29, 4  ;;  %p965_p8 = scmp.ne.s32.totalorder %s1190_s3, %s964_s7  ;;  %s34_s30 = int_to_ptr.vmem [resolvable:$true] %s33_s30 }
  0x15   :  { %p968_p9 = scmp.lt.u32.totalorder %s964_s7, %s1190_s3 }
  0x17   :  { %p970_p10 = pnand %p968_p9, %p965_p8 }
  0x19   :  { %973 = shalt.err (!%p970_p10)
}
  0x1a   :  { %s974_s12 = scalar_lea.vmem %s34_s30, 16384  ;;  %p979_p12 = scmp.lt.s32.totalorder %s34_s30, %s34_s30 }
  0x1b   :  { %p975_p11 = scmp.ne.s32.totalorder %s34_s30, %s974_s12  ;;  %p980_p13 = scmp.lt.s32.totalorder %s974_s12, %s974_s12 }
  0x1d   :  { %p981_p0 = por %p980_p13, %p979_p12 }
  0x1f   :  { %p982_p1 = pnand %p981_p0, %p975_p11 }
  0x21   :  { %985 = shalt.err (!%p982_p1)
}
  0x22   :  { %39 = dma.hbm_to_vmem [thread:$0]  %s1190_s3, 16384, %s34_s30, [#allocation7], %s1015_s25, %s1015_s25, %s1016_s26  }
  0x23   :  { %1008 = dma.done.wait [#allocation4], 512  }
  0x24   :  { %1009 = vsyncadd [#allocation4], 4294966784 }
  0x25   :  { %1010 = dma.done.wait [#allocation7], 16384  }
  0x26   :  { %1011 = vsyncadd [#allocation7], 4294950912  ;;  %v1078_v0 = vld [vmem:[#allocation3] sm:$0xff]  ;;  %v47_v1 = vld [vmem:[#allocation3 + $0x8] sm:$0xff]  ;;  %s1018_s14 = smov 126   ;;  %s1019_s15 = smov 127   ;;  %v54_v10 = vlaneseq }
  0x27   :  { %v1080_v2 = vld [vmem:[#allocation3 + $0x10] sm:$0xff]  ;;  %v873_v3 = vpack.i.bf16 %v47_v1, %v1078_v0  ;;  %v1083_v4 = vld [vmem:[#allocation3 + $0x18] sm:$0xff]  ;;  %s1020_s3 = smov 112   ;;  %s1021_s16 = smov 110   ;;  %v1023_v6 = vmov 0.0   ;;  %v1026_v7 = vmov 0  }
  0x28   :  { %v868_v5 = vpack.i.bf16 %v1083_v4, %v1080_v2  ;;  %s1022_s17 = smov 111   ;;  %305 = vmatprep.mubr.f32.mxu0 %v1023_v6  ;;  %376 = vmatprep.mubr.f32.mxu1 %v1023_v6  ;;  %s1024_s18 = smov 95   ;;  %v194_v8 = vld [vmem:[%s1189_s2] sm:$0xff]  ;;  %v1093_v11 = vand.u32 127, %v54_v10  ;;  %vm237_vm8 = vcmask 588800  }
  0x29   :  { %874 = vrot.lane.b32.xlu1 %v873_v3, %s1018_s14  ;;  %864 = vrot.lane.b32.xlu0 %v873_v3, %s1019_s15  ;;  %s1025_s19 = smov 96   ;;  %s1027_s20 = smov 94   ;;  %v679_v9 = vadd.f32 -0.5, %v194_v8 }
  0x2a   :  { %933 = vset.pattern.permute.xlu0 %v1026_v7  ;;  %vm56_vm0 = vcmp.lt.s32.totalorder %v1093_v11, 127  ;;  %vm65_vm1 = vcmp.lt.s32.totalorder %v1093_v11, 126  ;;  %vm74_vm2 = vcmp.lt.s32.totalorder %v1093_v11, 112  ;;  %vm83_vm3 = vcmp.lt.s32.totalorder %v1093_v11, 111 }
  0x2b   :  { %vm92_vm4 = vcmp.lt.s32.totalorder %v1093_v11, 110  ;;  %vm101_vm5 = vcmp.lt.s32.totalorder %v1093_v11, 96  ;;  %vm110_vm6 = vcmp.lt.s32.totalorder %v1093_v11, 95  ;;  %vm119_vm7 = vcmp.lt.s32.totalorder %v1093_v11, 94 }
  0x2d   :  { %879 = vrot.lane.b32.xlu1 %v873_v3, %s1020_s3  ;;  %869 = vrot.lane.b32.xlu0 %v868_v5, %s1019_s15 }
  0x31   :  { %889 = vrot.lane.b32.xlu1 %v868_v5, %s1020_s3  ;;  %884 = vrot.lane.b32.xlu0 %v868_v5, %s1018_s14 }
  0x35   :  { %899 = vrot.lane.b32.xlu1 %v873_v3, %s1021_s16  ;;  %894 = vrot.lane.b32.xlu0 %v873_v3, %s1022_s17 }
  0x39   :  { %909 = vrot.lane.b32.xlu1 %v868_v5, %s1021_s16  ;;  %904 = vrot.lane.b32.xlu0 %v868_v5, %s1022_s17 }
  0x3d   :  { %919 = vrot.lane.b32.xlu1 %v873_v3, %s1024_s18  ;;  %914 = vrot.lane.b32.xlu0 %v873_v3, %s1025_s19 }
  0x41   :  { %929 = vrot.lane.b32.xlu1 %v868_v5, %s1024_s18  ;;  %924 = vrot.lane.b32.xlu0 %v868_v5, %s1025_s19 }
  0x45   :  { %117 = vrot.lane.b32.xlu1 %v47_v1, %s1027_s20  ;;  %115 = vrot.lane.b32.xlu0 %v1078_v0, %s1027_s20 }
  0x49   :  { %187 = vrot.lane.b32.xlu1 %v1083_v4, %s1027_s20  ;;  %185 = vrot.lane.b32.xlu0 %v1080_v2, %s1027_s20 }
  0x4d   :  { %234 = vperm.xlu0 %933, %v679_v9  }
  0x9b   :  { %v875_v12 = vpop.permute.xlu1 %874  ;;  %v865_v13 = vpop.permute.xlu0 %864 }
  0x9c   :  { %v867_v14 = vunpack.i.h.bf16 %v865_v13  ;;  %v866_v15 = vunpack.i.l.bf16 %v865_v13  ;;  %v877_v16 = vunpack.i.h.bf16 %v875_v12  ;;  %v876_v17 = vunpack.i.l.bf16 %v875_v12 }
  0x9e   :  { %v58_v18 = vsel %vm56_vm0, %v867_v14, %v866_v15  ;;  %v57_v19 = vsel %vm56_vm0, %v866_v15, %v867_v14  ;;  %v67_v28 = vsel %vm65_vm1, %v877_v16, %v876_v17  ;;  %v66_v29 = vsel %vm65_vm1, %v876_v17, %v877_v16 }
  0x9f   :  { %v880_v20 = vpop.permute.xlu1 %879  ;;  %v870_v21 = vpop.permute.xlu0 %869  ;;  %v686_v22 = vpack.c.bf16 %v58_v18, %v47_v1  ;;  %v688_v23 = vpack.c.bf16 %v57_v19, %v1078_v0 }
  0xa0   :  { %v882_v24 = vunpack.i.h.bf16 %v880_v20  ;;  %v881_v25 = vunpack.i.l.bf16 %v880_v20  ;;  %v872_v26 = vunpack.i.h.bf16 %v870_v21  ;;  %v871_v27 = vunpack.i.l.bf16 %v870_v21 }
  0xa1   :  { %687 = vmatprep.subr.bf16.mxu0 %v686_v22 }
  0xa2   :  { %689 = vmatpush1.bf16.msra.mxu0 %v688_v23  ;;  %v76_v30 = vsel %vm74_vm2, %v882_v24, %v881_v25  ;;  %v134_v31 = vsel %vm56_vm0, %v872_v26, %v871_v27  ;;  %v75_v32 = vsel %vm74_vm2, %v881_v25, %v882_v24  ;;  %v133_v33 = vsel %vm56_vm0, %v871_v27, %v872_v26 }
  0xa3   :  { %v890_v34 = vpop.permute.xlu1 %889  ;;  %v885_v35 = vpop.permute.xlu0 %884  ;;  %v690_v36 = vpack.c.bf16 %v76_v30, %v67_v28  ;;  %v702_v37 = vpack.c.bf16 %v134_v31, %v1083_v4  ;;  %v692_v38 = vpack.c.bf16 %v75_v32, %v66_v29  ;;  %v704_v39 = vpack.c.bf16 %v133_v33, %v1080_v2  ;;  %v456_v29 = vld [vmem:[#allocation6 + $0x208] sm:$0xff]  ;;  %v458_v30 = vld [vmem:[#allocation6 + $0x218] sm:$0xff]  ;;  %v455_v31 = vld [vmem:[#allocation6 + $0x200] sm:$0xff] }
  0xa4   :  { %v892_v40 = vunpack.i.h.bf16 %v890_v34  ;;  %v891_v41 = vunpack.i.l.bf16 %v890_v34  ;;  %v887_v42 = vunpack.i.h.bf16 %v885_v35  ;;  %v886_v43 = vunpack.i.l.bf16 %v885_v35  ;;  %v457_v32 = vld [vmem:[#allocation6 + $0x210] sm:$0xff] }
  0xa5   :  { %691 = vmatprep.subr.bf16.mxu0 %v690_v36  ;;  %703 = vmatprep.subr.bf16.mxu1 %v702_v37  ;;  %v460_v37 = vld [vmem:[#allocation6 + $0x228] sm:$0xff] }
  0xa6   :  { %693 = vmatpush1.bf16.msra.mxu0 %v692_v38  ;;  %705 = vmatpush1.bf16.msra.mxu1 %v704_v39  ;;  %v142_v44 = vsel %vm65_vm1, %v887_v42, %v886_v43  ;;  %v150_v45 = vsel %vm74_vm2, %v892_v40, %v891_v41  ;;  %v141_v46 = vsel %vm65_vm1, %v886_v43, %v887_v42  ;;  %v462_v38 = vld [vmem:[#allocation6 + $0x238] sm:$0xff]  ;;  %v193_v43 = vld [vmem:[%s1188_s1] sm:$0xff]  ;;  %s1028_s1 = smov [#allocation8]  }
  0xa7   :  { %v900_v47 = vpop.permute.xlu1 %899  ;;  %v895_v48 = vpop.permute.xlu0 %894  ;;  %v706_v49 = vpack.c.bf16 %v150_v45, %v142_v44  ;;  %v149_v50 = vsel %vm74_vm2, %v891_v41, %v892_v40  ;;  %v392_v44 = vld [vmem:[#allocation6 + $0x8] sm:$0xff]  ;;  %v782_v45 = vpack.c.bf16 %v458_v30, %v456_v29  ;;  %s669_s24 = sshll.u32 %s1028_s1, 4  ;;  %s670_s24 = int_to_ptr.vmem [resolvable:$true] %s669_s24 }
  0xa8   :  { %v902_v51 = vunpack.i.h.bf16 %v900_v47  ;;  %v901_v52 = vunpack.i.l.bf16 %v900_v47  ;;  %v897_v53 = vunpack.i.h.bf16 %v895_v48  ;;  %v896_v54 = vunpack.i.l.bf16 %v895_v48  ;;  %v394_v48 = vld [vmem:[#allocation6 + $0x18] sm:$0xff]  ;;  %v408_v29 = vld [vmem:[#allocation6 + $0x88] sm:$0xff]  ;;  %s986_s25 = scalar_lea.vmem %s670_s24, 256  ;;  %p991_p3 = scmp.lt.s32.totalorder %s670_s24, %s670_s24 }
  0xa9   :  { %707 = vmatprep.subr.bf16.mxu1 %v706_v49  ;;  %v708_v55 = vpack.c.bf16 %v149_v50, %v141_v46  ;;  %v391_v49 = vld [vmem:[#allocation6] sm:$0xff]  ;;  %v393_v50 = vld [vmem:[#allocation6 + $0x10] sm:$0xff]  ;;  %p987_p2 = scmp.ne.s32.totalorder %s670_s24, %s986_s25  ;;  %p992_p4 = scmp.lt.s32.totalorder %s986_s25, %s986_s25 }
  0xaa   :  { %v85_v56 = vsel %vm83_vm3, %v897_v53, %v896_v54  ;;  %v94_v57 = vsel %vm92_vm4, %v902_v51, %v901_v52  ;;  %v84_v58 = vsel %vm83_vm3, %v896_v54, %v897_v53  ;;  %v93_v59 = vsel %vm92_vm4, %v901_v52, %v902_v51  ;;  %v396_v52 = vld [vmem:[#allocation6 + $0x28] sm:$0xff]  ;;  %v459_v54 = vld [vmem:[#allocation6 + $0x220] sm:$0xff] }
  0xab   :  { %709 = vmatpush1.bf16.msra.mxu1 %v708_v55  ;;  %v910_v60 = vpop.permute.xlu1 %909  ;;  %v905_v61 = vpop.permute.xlu0 %904  ;;  %v694_v62 = vpack.c.bf16 %v94_v57, %v85_v56  ;;  %v696_v63 = vpack.c.bf16 %v93_v59, %v84_v58  ;;  %v784_v51 = vpack.c.bf16 %v457_v32, %v455_v31  ;;  %v786_v53 = vpack.c.bf16 %v462_v38, %v460_v37  ;;  %v461_v55 = vld [vmem:[#allocation6 + $0x230] sm:$0xff]  ;;  %v398_v56 = vld [vmem:[#allocation6 + $0x38] sm:$0xff]  ;;  %v464_v57 = vld [vmem:[#allocation6 + $0x248] sm:$0xff]  ;;  %p993_p5 = por %p992_p4, %p991_p3 }
  0xac   :  { %v912_v0 = vunpack.i.h.bf16 %v910_v60  ;;  %v911_v1 = vunpack.i.l.bf16 %v910_v60  ;;  %v907_v2 = vunpack.i.h.bf16 %v905_v61  ;;  %v906_v3 = vunpack.i.l.bf16 %v905_v61  ;;  %v466_v58 = vld [vmem:[#allocation6 + $0x258] sm:$0xff]  ;;  %v471_v31 = vld [vmem:[#allocation6 + $0x280] sm:$0xff]  ;;  %v473_v32 = vld [vmem:[#allocation6 + $0x290] sm:$0xff] }
  0xad   :  { %695 = vmatprep.subr.bf16.mxu0 %v694_v62  ;;  %v718_v61 = vpack.c.bf16 %v394_v48, %v392_v44  ;;  %v407_v37 = vld [vmem:[#allocation6 + $0x80] sm:$0xff]  ;;  %v409_v38 = vld [vmem:[#allocation6 + $0x90] sm:$0xff]  ;;  %p994_p6 = pnand %p993_p5, %p987_p2 }
  0xae   :  { %697 = vmatpush1.bf16.msra.mxu0 %v696_v63  ;;  %v158_v4 = vsel %vm83_vm3, %v907_v2, %v906_v3  ;;  %v166_v5 = vsel %vm92_vm4, %v912_v0, %v911_v1  ;;  %v157_v6 = vsel %vm83_vm3, %v906_v3, %v907_v2  ;;  %v165_v7 = vsel %vm92_vm4, %v911_v1, %v912_v0  ;;  %v395_v1 = vld [vmem:[#allocation6 + $0x20] sm:$0xff]  ;;  %v397_v2 = vld [vmem:[#allocation6 + $0x30] sm:$0xff] }
  0xaf   :  { %v920_v8 = vpop.permute.xlu1 %919  ;;  %v915_v9 = vpop.permute.xlu0 %914  ;;  %v710_v10 = vpack.c.bf16 %v166_v5, %v158_v4  ;;  %v712_v12 = vpack.c.bf16 %v165_v7, %v157_v6  ;;  %v720_v0 = vpack.c.bf16 %v393_v50, %v391_v49  ;;  %v788_v3 = vpack.c.bf16 %v461_v55, %v459_v54  ;;  %v400_v5 = vld [vmem:[#allocation6 + $0x48] sm:$0xff]  ;;  %v463_v7 = vld [vmem:[#allocation6 + $0x240] sm:$0xff]  ;;  %v477_v44 = vld [vmem:[#allocation6 + $0x2b0] sm:$0xff] }
  0xb0   :  { %v922_v13 = vunpack.i.h.bf16 %v920_v8  ;;  %v921_v14 = vunpack.i.l.bf16 %v920_v8  ;;  %v917_v15 = vunpack.i.h.bf16 %v915_v9  ;;  %v916_v16 = vunpack.i.l.bf16 %v915_v9  ;;  %v465_v8 = vld [vmem:[#allocation6 + $0x250] sm:$0xff]  ;;  %v402_v9 = vld [vmem:[#allocation6 + $0x58] sm:$0xff]  ;;  %v411_v49 = vld [vmem:[#allocation6 + $0xa0] sm:$0xff] }
  0xb1   :  { %711 = vmatprep.subr.bf16.mxu1 %v710_v10  ;;  %v722_v4 = vpack.c.bf16 %v398_v56, %v396_v52  ;;  %v790_v6 = vpack.c.bf16 %v466_v58, %v464_v57  ;;  %v468_v10 = vld [vmem:[#allocation6 + $0x268] sm:$0xff]  ;;  %v724_v11 = vpack.c.bf16 %v397_v2, %v395_v1  ;;  %v736_v48 = vpack.c.bf16 %v409_v38, %v407_v37  ;;  %v413_v50 = vld [vmem:[#allocation6 + $0xb0] sm:$0xff]  ;;  %v479_v55 = vld [vmem:[#allocation6 + $0x2c0] sm:$0xff] }
  0xb2   :  { %713 = vmatpush1.bf16.msra.mxu1 %v712_v12  ;;  %v103_v17 = vsel %vm101_vm5, %v917_v15, %v916_v16  ;;  %v112_v18 = vsel %vm110_vm6, %v922_v13, %v921_v14  ;;  %v102_v19 = vsel %vm101_vm5, %v916_v16, %v917_v15  ;;  %v111_v20 = vsel %vm110_vm6, %v921_v14, %v922_v13  ;;  %v470_v12 = vld [vmem:[#allocation6 + $0x278] sm:$0xff]  ;;  %v399_v13 = vld [vmem:[#allocation6 + $0x40] sm:$0xff]  ;;  %v401_v14 = vld [vmem:[#allocation6 + $0x50] sm:$0xff] }
  0xb3   :  { %v930_v21 = vpop.permute.xlu1 %929  ;;  %v925_v22 = vpop.permute.xlu0 %924  ;;  %v698_v23 = vpack.c.bf16 %v112_v18, %v103_v17  ;;  %v700_v24 = vpack.c.bf16 %v111_v20, %v102_v19  ;;  %v792_v15 = vpack.c.bf16 %v465_v8, %v463_v7  ;;  %v726_v16 = vpack.c.bf16 %v402_v9, %v400_v5  ;;  %v404_v17 = vld [vmem:[#allocation6 + $0x68] sm:$0xff]  ;;  %v467_v19 = vld [vmem:[#allocation6 + $0x260] sm:$0xff]  ;;  %v469_v20 = vld [vmem:[#allocation6 + $0x270] sm:$0xff] }
  0xb4   :  { %v932_v25 = vunpack.i.h.bf16 %v930_v21  ;;  %v931_v26 = vunpack.i.l.bf16 %v930_v21  ;;  %v927_v27 = vunpack.i.h.bf16 %v925_v22  ;;  %v926_v28 = vunpack.i.l.bf16 %v925_v22  ;;  %v406_v21 = vld [vmem:[#allocation6 + $0x78] sm:$0xff]  ;;  %v472_v22 = vld [vmem:[#allocation6 + $0x288] sm:$0xff]  ;;  %v481_v56 = vld [vmem:[#allocation6 + $0x2d0] sm:$0xff] }
  0xb5   :  { %699 = vmatprep.subr.bf16.mxu0 %v698_v23  ;;  %v794_v18 = vpack.c.bf16 %v470_v12, %v468_v10  ;;  %v474_v23 = vld [vmem:[#allocation6 + $0x298] sm:$0xff]  ;;  %v484_v58 = vld [vmem:[#allocation6 + $0x2e8] sm:$0xff]  ;;  %v419_v9 = vld [vmem:[#allocation6 + $0xe0] sm:$0xff] }
  0xb6   :  { %701 = vmatpush1.bf16.msra.mxu0 %v700_v24  ;;  %v174_v33 = vsel %vm101_vm5, %v927_v27, %v926_v28  ;;  %v182_v34 = vsel %vm110_vm6, %v932_v25, %v931_v26  ;;  %v173_v35 = vsel %vm101_vm5, %v926_v28, %v927_v27  ;;  %v181_v36 = vsel %vm110_vm6, %v931_v26, %v932_v25  ;;  %v403_v25 = vld [vmem:[#allocation6 + $0x60] sm:$0xff]  ;;  %v405_v26 = vld [vmem:[#allocation6 + $0x70] sm:$0xff]  ;;  %v418_v57 = vld [vmem:[#allocation6 + $0xd8] sm:$0xff] }
  0xb7   :  { %v118_v39 = vpop.permute.xlu1 %117  ;;  %v116_v40 = vpop.permute.xlu0 %115  ;;  %v714_v41 = vpack.c.bf16 %v182_v34, %v174_v33  ;;  %v716_v42 = vpack.c.bf16 %v181_v36, %v173_v35  ;;  %v728_v24 = vpack.c.bf16 %v401_v14, %v399_v13  ;;  %v796_v27 = vpack.c.bf16 %v469_v20, %v467_v19  ;;  %v410_v33 = vld [vmem:[#allocation6 + $0x98] sm:$0xff]  ;;  %v476_v34 = vld [vmem:[#allocation6 + $0x2a8] sm:$0xff]  ;;  %v421_v10 = vld [vmem:[#allocation6 + $0xf0] sm:$0xff] }
  0xb8   :  { %v121_v46 = vsel %vm119_vm7, %v118_v39, %v116_v40  ;;  %v120_v47 = vsel %vm119_vm7, %v116_v40, %v118_v39  ;;  %v730_v28 = vpack.c.bf16 %v406_v21, %v404_v17  ;;  %v798_v30 = vpack.c.bf16 %v474_v23, %v472_v22  ;;  %v478_v35 = vld [vmem:[#allocation6 + $0x2b8] sm:$0xff]  ;;  %v420_v1 = vld [vmem:[#allocation6 + $0xe8] sm:$0xff]  ;;  %v423_v21 = vld [vmem:[#allocation6 + $0x100] sm:$0xff] }
  0xb9   :  { %257 = vmatprep.subr.mxu0 %v121_v46  ;;  %715 = vmatprep.subr.bf16.mxu1 %v714_v41  ;;  %v732_v36 = vpack.c.bf16 %v405_v26, %v403_v25  ;;  %v800_v39 = vpack.c.bf16 %v473_v32, %v471_v31  ;;  %v734_v40 = vpack.c.bf16 %v410_v33, %v408_v29  ;;  %v412_v41 = vld [vmem:[#allocation6 + $0xa8] sm:$0xff]  ;;  %v422_v5 = vld [vmem:[#allocation6 + $0xf8] sm:$0xff]  ;;  %v425_v22 = vld [vmem:[#allocation6 + $0x110] sm:$0xff] }
  0xba   :  { %258 = vmatpush1.msra.mxu0 %v120_v47  ;;  %717 = vmatpush1.bf16.msra.mxu1 %v716_v42  ;;  %v802_v42 = vpack.c.bf16 %v478_v35, %v476_v34  ;;  %v480_v46 = vld [vmem:[#allocation6 + $0x2c8] sm:$0xff]  ;;  %v482_v47 = vld [vmem:[#allocation6 + $0x2d8] sm:$0xff]  ;;  %v748_v20 = vpack.c.bf16 %v421_v10, %v419_v9  ;;  %v752_v32 = vpack.c.bf16 %v425_v22, %v423_v21  ;;  %v427_v33 = vld [vmem:[#allocation6 + $0x120] sm:$0xff] }
  0xbb   :  { %v188_v59 = vpop.permute.xlu1 %187  ;;  %v186_v60 = vpop.permute.xlu0 %185  ;;  %680 = vmatmul.mubr.msk.f32.vlgmr.msra.gmra.mrb[0].mxu0 %vm237_vm8, %v193_v43  ;;  %783 = vmatprep.subr.bf16.mxu0 %v782_v45  ;;  %v414_v45 = vld [vmem:[#allocation6 + $0xb8] sm:$0xff]  ;;  %v806_v54 = vpack.c.bf16 %v482_v47, %v480_v46  ;;  %v424_v13 = vld [vmem:[#allocation6 + $0x108] sm:$0xff]  ;;  %v495_v38 = vld [vmem:[#allocation6 + $0x340] sm:$0xff] }
  0xbc   :  { %v190_v62 = vsel %vm119_vm7, %v188_v59, %v186_v60  ;;  %v189_v63 = vsel %vm119_vm7, %v186_v60, %v188_v59  ;;  %785 = vmatpush1.bf16.msra.mxu0 %v784_v51  ;;  %v738_v52 = vpack.c.bf16 %v414_v45, %v412_v41  ;;  %v486_v59 = vld [vmem:[#allocation6 + $0x2f8] sm:$0xff]  ;;  %v740_v60 = vpack.c.bf16 %v413_v50, %v411_v49  ;;  %v428_v25 = vld [vmem:[#allocation6 + $0x128] sm:$0xff]  ;;  %v431_v45 = vld [vmem:[#allocation6 + $0x140] sm:$0xff] }
  0xbd   :  { %328 = vmatprep.subr.mxu1 %v190_v62  ;;  %787 = vmatprep.subr.bf16.mxu0 %v786_v53  ;;  %v416_v53 = vld [vmem:[#allocation6 + $0xc8] sm:$0xff]  ;;  %v417_v62 = vld [vmem:[#allocation6 + $0xd0] sm:$0xff]  ;;  %v810_v2 = vpack.c.bf16 %v486_v59, %v484_v58  ;;  %v490_v7 = vld [vmem:[#allocation6 + $0x318] sm:$0xff] }
  0xbe   :  { %329 = vmatpush1.msra.mxu1 %v189_v63  ;;  %v808_v63 = vpack.c.bf16 %v481_v56, %v479_v55  ;;  %v426_v17 = vld [vmem:[#allocation6 + $0x118] sm:$0xff]  ;;  %v433_v46 = vld [vmem:[#allocation6 + $0x150] sm:$0xff]  ;;  %v436_v47 = vld [vmem:[#allocation6 + $0x168] sm:$0xff] }
  0xbf   :  { %681 = vmatmul.mubr.msk.f32.vlgmr.msra.gmra.mrb[0].mxu1 %vm237_vm8, %v193_v43  ;;  %719 = vmatprep.subr.bf16.mxu1 %v718_v61  ;;  %v475_v43 = vld [vmem:[#allocation6 + $0x2a0] sm:$0xff]  ;;  %v494_v19 = vld [vmem:[#allocation6 + $0x338] sm:$0xff]  ;;  %v760_v49 = vpack.c.bf16 %v433_v46, %v431_v45  ;;  %v505_v9 = vld [vmem:[#allocation6 + $0x390] sm:$0xff] }
  0xc0   :  { %721 = vmatpush1.bf16.msra.mxu1 %v720_v0  ;;  %789 = vmatpush1.bf16.msra.mxu0 %v788_v3  ;;  %v804_v51 = vpack.c.bf16 %v477_v44, %v475_v43  ;;  %v415_v61 = vld [vmem:[#allocation6 + $0xc0] sm:$0xff]  ;;  %v742_v0 = vpack.c.bf16 %v418_v57, %v416_v53  ;;  %v430_v29 = vld [vmem:[#allocation6 + $0x138] sm:$0xff]  ;;  %v440_v57 = vld [vmem:[#allocation6 + $0x188] sm:$0xff] }
  0xc1   :  { %723 = vmatprep.subr.bf16.mxu1 %v722_v4  ;;  %791 = vmatprep.subr.bf16.mxu0 %v790_v6  ;;  %v483_v3 = vld [vmem:[#allocation6 + $0x2e0] sm:$0xff]  ;;  %v485_v4 = vld [vmem:[#allocation6 + $0x2f0] sm:$0xff]  ;;  %v488_v6 = vld [vmem:[#allocation6 + $0x308] sm:$0xff]  ;;  %v744_v8 = vpack.c.bf16 %v417_v62, %v415_v61  ;;  %v754_v35 = vpack.c.bf16 %v430_v29, %v428_v25 }
  0xc2   :  { %v812_v12 = vpack.c.bf16 %v485_v4, %v483_v3  ;;  %v814_v14 = vpack.c.bf16 %v490_v7, %v488_v6  ;;  %v498_v31 = vld [vmem:[#allocation6 + $0x358] sm:$0xff]  ;;  %v499_v59 = vld [vmem:[#allocation6 + $0x360] sm:$0xff]  ;;  %v501_v61 = vld [vmem:[#allocation6 + $0x370] sm:$0xff] }
  0xc3   :  { %v434_v41 = vld [vmem:[#allocation6 + $0x158] sm:$0xff]  ;;  %v439_v62 = vld [vmem:[#allocation6 + $0x180] sm:$0xff]  ;;  %v509_v21 = vld [vmem:[#allocation6 + $0x3b0] sm:$0xff] }
  0xc4   :  { %725 = vmatpush1.bf16.msra.mxu1 %v724_v11  ;;  %793 = vmatpush1.bf16.msra.mxu0 %v792_v15  ;;  %v746_v11 = vpack.c.bf16 %v422_v5, %v420_v1  ;;  %v487_v15 = vld [vmem:[#allocation6 + $0x300] sm:$0xff]  ;;  %v502_v55 = vld [vmem:[#allocation6 + $0x378] sm:$0xff]  ;;  %v444_v5 = vld [vmem:[#allocation6 + $0x1a8] sm:$0xff] }
  0xc5   :  { %727 = vmatprep.subr.bf16.mxu1 %v726_v16  ;;  %795 = vmatprep.subr.bf16.mxu0 %v794_v18  ;;  %v489_v16 = vld [vmem:[#allocation6 + $0x310] sm:$0xff]  ;;  %v492_v18 = vld [vmem:[#allocation6 + $0x328] sm:$0xff]  ;;  %v442_v58 = vld [vmem:[#allocation6 + $0x198] sm:$0xff] }
  0xc6   :  { %v816_v23 = vpack.c.bf16 %v489_v16, %v487_v15  ;;  %v818_v26 = vpack.c.bf16 %v494_v19, %v492_v18  ;;  %v506_v3 = vld [vmem:[#allocation6 + $0x398] sm:$0xff]  ;;  %v503_v7 = vld [vmem:[#allocation6 + $0x380] sm:$0xff]  ;;  %v452_v29 = vld [vmem:[#allocation6 + $0x1e8] sm:$0xff] }
  0xc7   :  { %v446_v6 = vld [vmem:[#allocation6 + $0x1b8] sm:$0xff]  ;;  %v443_v10 = vld [vmem:[#allocation6 + $0x1a0] sm:$0xff] }
  0xc8   :  { %729 = vmatpush1.bf16.msra.mxu1 %v728_v24  ;;  %797 = vmatpush1.bf16.msra.mxu0 %v796_v27  ;;  %v750_v24 = vpack.c.bf16 %v426_v17, %v424_v13  ;;  %v491_v27 = vld [vmem:[#allocation6 + $0x320] sm:$0xff]  ;;  %v510_v15 = vld [vmem:[#allocation6 + $0x3b8] sm:$0xff]  ;;  %v448_v17 = vld [vmem:[#allocation6 + $0x1c8] sm:$0xff] }
  0xc9   :  { %731 = vmatprep.subr.bf16.mxu1 %v730_v28  ;;  %799 = vmatprep.subr.bf16.mxu0 %v798_v30  ;;  %v493_v28 = vld [vmem:[#allocation6 + $0x330] sm:$0xff]  ;;  %v496_v30 = vld [vmem:[#allocation6 + $0x348] sm:$0xff]  ;;  %v450_v18 = vld [vmem:[#allocation6 + $0x1d8] sm:$0xff] }
  0xca   :  { %v820_v34 = vpack.c.bf16 %v493_v28, %v491_v27  ;;  %v822_v37 = vpack.c.bf16 %v498_v31, %v496_v30  ;;  %v507_v19 = vld [vmem:[#allocation6 + $0x3a0] sm:$0xff]  ;;  %v514_v27 = vld [vmem:[#allocation6 + $0x3d8] sm:$0xff] }
  0xcb   :  { %v447_v22 = vld [vmem:[#allocation6 + $0x1c0] sm:$0xff]  ;;  %v454_v30 = vld [vmem:[#allocation6 + $0x1f8] sm:$0xff] }
  0xcc   :  { %733 = vmatpush1.bf16.msra.mxu1 %v732_v36  ;;  %801 = vmatpush1.bf16.msra.mxu0 %v800_v39  ;;  %v429_v36 = vld [vmem:[#allocation6 + $0x130] sm:$0xff]  ;;  %v511_v31 = vld [vmem:[#allocation6 + $0x3c0] sm:$0xff] }
  0xcd   :  { %735 = vmatprep.subr.bf16.mxu1 %v734_v40  ;;  %803 = vmatprep.subr.bf16.mxu0 %v802_v42  ;;  %v497_v39 = vld [vmem:[#allocation6 + $0x350] sm:$0xff]  ;;  %v432_v40 = vld [vmem:[#allocation6 + $0x148] sm:$0xff]  ;;  %v756_v42 = vpack.c.bf16 %v429_v36, %v427_v33 }
  0xce   :  { %v824_v43 = vpack.c.bf16 %v497_v39, %v495_v38  ;;  %v758_v44 = vpack.c.bf16 %v434_v41, %v432_v40  ;;  %v513_v33 = vld [vmem:[#allocation6 + $0x3d0] sm:$0xff]  ;;  %v516_v38 = vld [vmem:[#allocation6 + $0x3e8] sm:$0xff]  ;;  %v518_v39 = vld [vmem:[#allocation6 + $0x3f8] sm:$0xff] }
  0xcf   :  { %v840_v36 = vpack.c.bf16 %v513_v33, %v511_v31  ;;  %v842_v40 = vpack.c.bf16 %v518_v39, %v516_v38  ;;  %v515_v41 = vld [vmem:[#allocation6 + $0x3e0] sm:$0xff] }
  0xd0   :  { %737 = vmatpush1.bf16.msra.mxu1 %v736_v48  ;;  %805 = vmatpush1.bf16.msra.mxu0 %v804_v51  ;;  %v438_v48 = vld [vmem:[#allocation6 + $0x178] sm:$0xff]  ;;  %v435_v51 = vld [vmem:[#allocation6 + $0x160] sm:$0xff] }
  0xd1   :  { %739 = vmatprep.subr.bf16.mxu1 %v738_v52  ;;  %807 = vmatprep.subr.bf16.mxu0 %v806_v54  ;;  %v762_v50 = vpack.c.bf16 %v438_v48, %v436_v47  ;;  %v437_v52 = vld [vmem:[#allocation6 + $0x170] sm:$0xff]  ;;  %v500_v54 = vld [vmem:[#allocation6 + $0x368] sm:$0xff] }
  0xd2   :  { %v764_v53 = vpack.c.bf16 %v437_v52, %v435_v51  ;;  %v826_v56 = vpack.c.bf16 %v502_v55, %v500_v54 }
  0xd4   :  { %741 = vmatpush1.bf16.msra.mxu1 %v740_v60  ;;  %809 = vmatpush1.bf16.msra.mxu0 %v808_v63  ;;  %v766_v60 = vpack.c.bf16 %v442_v58, %v440_v57  ;;  %v441_v63 = vld [vmem:[#allocation6 + $0x190] sm:$0xff] }
  0xd5   :  { %743 = vmatprep.subr.bf16.mxu1 %v742_v0  ;;  %811 = vmatprep.subr.bf16.mxu0 %v810_v2  ;;  %v828_v0 = vpack.c.bf16 %v501_v61, %v499_v59  ;;  %v768_v1 = vpack.c.bf16 %v441_v63, %v439_v62  ;;  %v504_v2 = vld [vmem:[#allocation6 + $0x388] sm:$0xff] }
  0xd6   :  { %v830_v4 = vpack.c.bf16 %v506_v3, %v504_v2 }
  0xd8   :  { %745 = vmatpush1.bf16.msra.mxu1 %v744_v8  ;;  %813 = vmatpush1.bf16.msra.mxu0 %v812_v12  ;;  %v770_v8 = vpack.c.bf16 %v446_v6, %v444_v5  ;;  %v445_v12 = vld [vmem:[#allocation6 + $0x1b0] sm:$0xff] }
  0xd9   :  { %747 = vmatprep.subr.bf16.mxu1 %v746_v11  ;;  %815 = vmatprep.subr.bf16.mxu0 %v814_v14  ;;  %v832_v11 = vpack.c.bf16 %v505_v9, %v503_v7  ;;  %v772_v13 = vpack.c.bf16 %v445_v12, %v443_v10  ;;  %v508_v14 = vld [vmem:[#allocation6 + $0x3a8] sm:$0xff] }
  0xda   :  { %v834_v16 = vpack.c.bf16 %v510_v15, %v508_v14 }
  0xdc   :  { %749 = vmatpush1.bf16.msra.mxu1 %v748_v20  ;;  %817 = vmatpush1.bf16.msra.mxu0 %v816_v23  ;;  %v774_v20 = vpack.c.bf16 %v450_v18, %v448_v17  ;;  %v449_v23 = vld [vmem:[#allocation6 + $0x1d0] sm:$0xff] }
  0xdd   :  { %751 = vmatprep.subr.bf16.mxu1 %v750_v24  ;;  %819 = vmatprep.subr.bf16.mxu0 %v818_v26  ;;  %v836_v24 = vpack.c.bf16 %v509_v21, %v507_v19  ;;  %v776_v25 = vpack.c.bf16 %v449_v23, %v447_v22  ;;  %v512_v26 = vld [vmem:[#allocation6 + $0x3c8] sm:$0xff] }
  0xde   :  { %v838_v28 = vpack.c.bf16 %v514_v27, %v512_v26 }
  0xe0   :  { %753 = vmatpush1.bf16.msra.mxu1 %v752_v32  ;;  %821 = vmatpush1.bf16.msra.mxu0 %v820_v34  ;;  %v778_v32 = vpack.c.bf16 %v454_v30, %v452_v29  ;;  %v451_v34 = vld [vmem:[#allocation6 + $0x1e0] sm:$0xff] }
  0xe1   :  { %755 = vmatprep.subr.bf16.mxu1 %v754_v35  ;;  %823 = vmatprep.subr.bf16.mxu0 %v822_v37  ;;  %v453_v35 = vld [vmem:[#allocation6 + $0x1f0] sm:$0xff] }
  0xe2   :  { %v780_v37 = vpack.c.bf16 %v453_v35, %v451_v34 }
  0xe4   :  { %757 = vmatpush1.bf16.msra.mxu1 %v756_v42  ;;  %825 = vmatpush1.bf16.msra.mxu0 %v824_v43  ;;  %v517_v42 = vld [vmem:[#allocation6 + $0x3f0] sm:$0xff] }
  0xe5   :  { %759 = vmatprep.subr.bf16.mxu1 %v758_v44  ;;  %827 = vmatprep.subr.bf16.mxu0 %v826_v56  ;;  %v844_v43 = vpack.c.bf16 %v517_v42, %v515_v41  ;;  %v235_v44 = vpop.permute.xlu0 %234 }
  0xe8   :  { %761 = vmatpush1.bf16.msra.mxu1 %v760_v49  ;;  %829 = vmatpush1.bf16.msra.mxu0 %v828_v0 }
  0xe9   :  { %763 = vmatprep.subr.bf16.mxu1 %v762_v50  ;;  %831 = vmatprep.subr.bf16.mxu0 %v830_v4 }
  0xec   :  { %765 = vmatpush1.bf16.msra.mxu1 %v764_v53  ;;  %833 = vmatpush1.bf16.msra.mxu0 %v832_v11 }
  0xed   :  { %767 = vmatprep.subr.bf16.mxu1 %v766_v60  ;;  %835 = vmatprep.subr.bf16.mxu0 %v834_v16 }
  0xf0   :  { %769 = vmatpush1.bf16.msra.mxu1 %v768_v1  ;;  %837 = vmatpush1.bf16.msra.mxu0 %v836_v24 }
  0xf1   :  { %771 = vmatprep.subr.bf16.mxu1 %v770_v8  ;;  %839 = vmatprep.subr.bf16.mxu0 %v838_v28 }
  0xf4   :  { %773 = vmatpush1.bf16.msra.mxu1 %v772_v13  ;;  %841 = vmatpush1.bf16.msra.mxu0 %v840_v36 }
  0xf5   :  { %775 = vmatprep.subr.bf16.mxu1 %v774_v20  ;;  %843 = vmatprep.subr.bf16.mxu0 %v842_v40 }
  0xf8   :  { %777 = vmatpush1.bf16.msra.mxu1 %v776_v25  ;;  %845 = vmatpush1.bf16.msra.mxu0 %v844_v43 }
  0xf9   :  { %779 = vmatprep.subr.bf16.mxu1 %v778_v32 }
  0xfc   :  { %781 = vmatpush1.bf16.msra.mxu1 %v780_v37 }
 0x18e   :  { %v307_v45 = vpop.f32.mrb[0].mxu0 }
 0x18f   :  { %v308_v46 = vadd.f32 %v307_v45, %v235_v44  ;;  %v309_v47 = vpop.f32.mrb[1].mxu0 }
 0x190   :  { %v310_v48 = vadd.f32 %v309_v47, %v235_v44 }
 0x191   :  { %934 = vtanh.f32 %v308_v46 }
 0x192   :  { %936 = vtanh.f32 %v310_v48  ;;  %v378_v49 = vpop.f32.mrb[0].mxu1 }
 0x193   :  { %v379_v50 = vadd.f32 %v378_v49, %v235_v44  ;;  %v380_v51 = vpop.f32.mrb[1].mxu1 }
 0x194   :  { %v381_v52 = vadd.f32 %v380_v51, %v235_v44 }
 0x195   :  { %938 = vtanh.f32 %v379_v50 }
 0x196   :  { %940 = vtanh.f32 %v381_v52 }
 0x19b   :  { %v935_v53 = vpop.eup %934 }
 0x19c   :  { %v937_v54 = vpop.eup %936  ;;  %v682_v55 = vadd.f32 -0.2, %v935_v53 }
 0x19d   :  { %v683_v56 = vadd.f32 -0.2, %v937_v54 }
 0x19f   :  { %v939_v57 = vpop.eup %938  ;;  %583 = vmatprep.mubr.f32.mxu1 %v683_v56 }
 0x1a0   :  { %v941_v58 = vpop.eup %940  ;;  %584 = vmatmul.mubr.f32.vlgmr.msra.gmra.mrb[2].mxu1 %v682_v55  ;;  %v684_v60 = vadd.f32 -0.2, %v939_v57 }
 0x1a1   :  { %v685_v59 = vadd.f32 -0.2, %v941_v58 }
 0x1a3   :  { %654 = vmatprep.mubr.f32.mxu0 %v685_v59 }
 0x1a4   :  { %655 = vmatmul.mubr.f32.vlgmr.msra.gmra.mrb[2].mxu0 %v684_v60 }
 0x273   :  { %v585_v61 = vpop.f32.mrb[2].mxu1 }
 0x274   :  { %v587_v62 = vpop.f32.mrb[3].mxu1 }
 0x277   :  { %v656_v63 = vpop.f32.mrb[2].mxu0 }
 0x278   :  { %v657_v0 = vadd.f32 %v656_v63, %v585_v61  ;;  %v658_v1 = vpop.f32.mrb[3].mxu0 }
 0x279   :  { %v659_v2 = vadd.f32 %v658_v1, %v587_v62 }
 0x27a   :  { %661 = vst [vmem:[#allocation8] sm:$0xff] %v657_v0 }
 0x27b   :  { %662 = vst [vmem:[#allocation8 + $0x8] sm:$0xff] %v659_v2 }
 0x27c   :  { %997 = shalt.err (!%p994_p6)
}
 0x27d   :  { %s998_s28 = scalar_lea.hbm %s1191_s4, 256 }
 0x27e   :  { %p999_p7 = scmp.ne.s32.totalorder %s1191_s4, %s998_s28  ;;  %p1002_p8 = scmp.lt.u32.totalorder %s998_s28, %s1191_s4 }
 0x280   :  { %p1004_p9 = pnand %p1002_p8, %p999_p7 }
 0x282   :  { %1007 = shalt.err (!%p1004_p9)
}
 0x283   :  { %672 = dma.vmem_to_hbm [thread:$0]  %s670_s24, 256, %s1191_s4, [#allocation5]  }
 0x284   :  { %1012 = dma.done.wait [#allocation5], 256  }
 0x285   :  { %1013 = vsyncadd [#allocation5], 4294967040 }
 0x286   :  { %676 = vsyncpa [#allocation4], 1 }
 0x287   :  { %677 = vsyncpa [#allocation7], 1 }
 0x288   :  { %678 = vsyncpa [#allocation5], 1 }

</bundles_post_ra>
